<compile_context>
chip_gen: v7x
topology: tpu7x:2x2x1
jax: 0.10.0
libtpu: 0.0.40
codegen_flags: <defaults>
</compile_context>

<pallas_src>
import functools

import jax
import jax.numpy as jnp
from jax.experimental import pallas as pl
from jax.experimental.pallas import tpu as pltpu

EMB = 64
H1 = 512
H2 = 256
OUT = 1
LEAK = 0.2


def _disc_kernel(x_ref, w1_ref, b1_ref, w2_ref, b2_ref, w3_ref, b3_ref, o_ref):
    # x arrives f32; cast to bf16 in-kernel (cheap VPU op hidden under the MXU).
    x = x_ref[...].astype(jnp.bfloat16)                          # (block_b, EMB)

    # Linear(64 -> 512) + LeakyReLU(0.2): bf16 MXU operands, f32 accumulation.
    h1 = jnp.dot(x, w1_ref[...], preferred_element_type=jnp.float32) + b1_ref[...]
    h1 = jnp.maximum(h1, LEAK * h1)                              # f32

    # Linear(512 -> 256) + LeakyReLU(0.2)
    h2 = jnp.dot(h1.astype(jnp.bfloat16), w2_ref[...],
                 preferred_element_type=jnp.float32) + b2_ref[...]
    h2 = jnp.maximum(h2, LEAK * h2)                              # f32 (block_b, H2)

    # Linear(256 -> 1), emitted lane-dense:
    #   (1, H2) @ (block_b, H2)^T -> (1, block_b)   (dot with trans_b)
    logit = jax.lax.dot_general(
        w3_ref[...], h2,
        dimension_numbers=(((1,), (1,)), ((), ())),
        preferred_element_type=jnp.float32) + b3_ref[...]        # (1, block_b)

    # Sigmoid on the EUP; unmasked lane-dense store.
    o_ref[...] = jax.nn.sigmoid(logit).astype(o_ref.dtype)


def _pick_block_b(B, cap=1024):
    """Batch tile: big enough to amortize the ~0.35us grid-step overhead,
    capped for VMEM (safe on v5e's 16 MiB scoped default), and split into
    >=2 tiles for larger batches so v7x's two TensorCores both get work."""
    bb = -(-B // 8) * 8                      # round up to a sublane multiple
    if bb > cap:
        return cap
    if bb >= 512:
        return -(-(bb // 2) // 256) * 256    # ~two tiles, 256-aligned
    return bb


@functools.partial(jax.jit, static_argnames=("block_b",))
def _forward(x, params, *, block_b):
    B = x.shape[0]
    nb = pl.cdiv(B, block_b)

    w1 = params["w1"]            # (EMB, H1) bf16, resident
    b1 = params["b1"]            # (1, H1)   f32
    w2 = params["w2"]            # (H1, H2)  bf16, resident
    b2 = params["b2"]            # (1, H2)   f32
    w3 = params["w3"]            # (1, H2)   f32 lane-dense row
    b3 = params["b3"]            # (1, 1)    f32

    resident = lambda shape: pl.BlockSpec(shape, lambda i: (0, 0))

    out = pl.pallas_call(
        _disc_kernel,
        out_shape=jax.ShapeDtypeStruct((nb, block_b), jnp.float32),
        grid=(nb,),
        in_specs=[
            pl.BlockSpec((block_b, EMB), lambda i: (i, 0)),      # x batch tile (f32)
            resident((EMB, H1)),                                 # w1
            resident((1, H1)),                                   # b1
            resident((H1, H2)),                                  # w2
            resident((1, H2)),                                   # b2
            resident((1, H2)),                                   # w3 row
            resident((1, 1)),                                    # b3
        ],
        out_specs=pl.BlockSpec((1, block_b), lambda i: (i, 0)),  # lane-dense row
        compiler_params=pltpu.CompilerParams(
            dimension_semantics=("parallel",),
        ),
    )(x, w1, b1, w2, b2, w3, b3)

    # (nb, block_b) -> (B, 1); garbage tail rows (partial last block) sliced off.
    return out.reshape(nb * block_b)[:B].reshape(B, OUT)


def discriminator_gan_sawyer(x, params, *, block_b=None):
    """x: (B, EMB) float32. params: dict with pre-transposed (in, out) weights."""
    if block_b is None:
        block_b = _pick_block_b(x.shape[0])
    return _forward(x, params, block_b=block_b)


def init_params(key):
    """PyTorch-Linear-style init (uniform +-1/sqrt(fan_in)).
    w1/w2 stored pre-transposed (in, out) in bf16; w3 as a lane-dense (1, in) f32 row."""
    ks = jax.random.split(key, 6)

    def lin(kw, kb, fan_in, fan_out):
        bound = 1.0 / jnp.sqrt(jnp.float32(fan_in))
        w = jax.random.uniform(kw, (fan_in, fan_out), jnp.float32, -bound, bound)
        b = jax.random.uniform(kb, (1, fan_out), jnp.float32, -bound, bound)
        return w, b

    w1, b1 = lin(ks[0], ks[1], EMB, H1)
    w2, b2 = lin(ks[2], ks[3], H1, H2)
    w3c, b3 = lin(ks[4], ks[5], H2, OUT)          # (H2, 1), (1, 1)
    return {
        "w1": w1.astype(jnp.bfloat16),
        "b1": b1,
        "w2": w2.astype(jnp.bfloat16),
        "b2": b2,
        "w3": w3c.reshape(1, H2),                 # f32 lane-dense row
        "b3": b3.reshape(1, 1),
    }


def _reference(x, p):
    w1 = p["w1"].astype(jnp.float32)
    w2 = p["w2"].astype(jnp.float32)
    h1 = x @ w1 + p["b1"]
    h1 = jnp.where(h1 > 0, h1, LEAK * h1)
    h2 = h1 @ w2 + p["b2"]
    h2 = jnp.where(h2 > 0, h2, LEAK * h2)
    logits = h2 @ p["w3"].reshape(H2, OUT) + p["b3"]
    return jax.nn.sigmoid(logits)


if __name__ == "__main__":
    key = jax.random.PRNGKey(0)
    k_param, k_x1, k_x2 = jax.random.split(key, 3)

    params = init_params(k_param)

    # Small single-tile batch (embedding_size = 64 as in the module default).
    x_small = jax.random.normal(k_x1, (8, EMB), jnp.float32)
    out_small = jax.block_until_ready(discriminator_gan_sawyer(x_small, params))
    ref_small = _reference(x_small, params)
    assert out_small.shape == (8, OUT)
    assert jnp.allclose(out_small, ref_small, atol=2e-2, rtol=2e-2), "mismatch (B=8)"

    # Ragged multi-tile batch: exercises the partial final input block path.
    x_rag = jax.random.normal(k_x2, (200, EMB), jnp.float32)
    out_rag = jax.block_until_ready(
        discriminator_gan_sawyer(x_rag, params, block_b=128))
    ref_rag = _reference(x_rag, params)
    assert out_rag.shape == (200, OUT)
    assert jnp.allclose(out_rag, ref_rag, atol=2e-2, rtol=2e-2), "mismatch (B=200)"

    print("KERNEL_OK")
</pallas_src>

<mosaic_0001>
module attributes {stable_mosaic.version = 11 : i64} {
  func.func @_disc_kernel(%arg0: i32, %arg1: memref<8x64xf32, #tpu.memory_space<vmem>>, %arg2: memref<64x512xbf16, #tpu.memory_space<vmem>>, %arg3: memref<1x512xf32, #tpu.memory_space<vmem>>, %arg4: memref<512x256xbf16, #tpu.memory_space<vmem>>, %arg5: memref<1x256xf32, #tpu.memory_space<vmem>>, %arg6: memref<1x256xf32, #tpu.memory_space<vmem>>, %arg7: memref<1x1xf32, #tpu.memory_space<vmem>>, %arg8: memref<1x8xf32, #tpu.memory_space<vmem>>) attributes {dimension_semantics = [#tpu.dimension_semantics<parallel>], iteration_bounds = array<i64: 1>, scalar_prefetch = 0 : i64, scratch_operands = 0 : i64, tpu.core_type = #tpu.core_type<tc>, window_params = [{transform_indices = @transform_0, window_bounds = array<i64: 8, 64>}, {pipeline_mode = #tpu.pipeline_mode<synchronous>, transform_indices = @transform_1, window_bounds = array<i64: 64, 512>}, {pipeline_mode = #tpu.pipeline_mode<synchronous>, transform_indices = @transform_2, window_bounds = array<i64: 1, 512>}, {pipeline_mode = #tpu.pipeline_mode<synchronous>, transform_indices = @transform_3, window_bounds = array<i64: 512, 256>}, {pipeline_mode = #tpu.pipeline_mode<synchronous>, transform_indices = @transform_4, window_bounds = array<i64: 1, 256>}, {pipeline_mode = #tpu.pipeline_mode<synchronous>, transform_indices = @transform_5, window_bounds = array<i64: 1, 256>}, {pipeline_mode = #tpu.pipeline_mode<synchronous>, transform_indices = @transform_6, window_bounds = array<i64: 1, 1>}, {transform_indices = @transform_7, window_bounds = array<i64: 1, 8>}]} {
    %c0 = arith.constant 0 : index
    %c0_0 = arith.constant 0 : index
    %0 = vector.load %arg1[%c0, %c0_0] : memref<8x64xf32, #tpu.memory_space<vmem>>, vector<8x64xf32>
    %1 = arith.truncf %0 : vector<8x64xf32> to vector<8x64xbf16>
    %c0_1 = arith.constant 0 : index
    %c0_2 = arith.constant 0 : index
    %2 = vector.load %arg2[%c0_1, %c0_2] : memref<64x512xbf16, #tpu.memory_space<vmem>>, vector<64x512xbf16>
    %cst = arith.constant dense<0.000000e+00> : vector<8x512xf32>
    %3 = tpu.matmul %1, %2, %cst {dimension_numbers = #tpu.dot_dimension_numbers<[1], [0], [0], [1], [0, 0, 1, 1], [], []>} : vector<8x64xbf16>, vector<64x512xbf16>, vector<8x512xf32> -> vector<8x512xf32>
    %c0_3 = arith.constant 0 : index
    %c0_4 = arith.constant 0 : index
    %4 = vector.load %arg3[%c0_3, %c0_4] : memref<1x512xf32, #tpu.memory_space<vmem>>, vector<1x512xf32>
    %5 = vector.broadcast %4 : vector<1x512xf32> to vector<8x512xf32>
    %6 = arith.addf %3, %5 : vector<8x512xf32>
    %cst_5 = arith.constant 2.000000e-01 : f32
    %7 = vector.broadcast %cst_5 : f32 to vector<8x512xf32>
    %8 = arith.mulf %7, %6 : vector<8x512xf32>
    %9 = arith.maximumf %6, %8 : vector<8x512xf32>
    %10 = arith.truncf %9 : vector<8x512xf32> to vector<8x512xbf16>
    %c0_6 = arith.constant 0 : index
    %c0_7 = arith.constant 0 : index
    %11 = vector.load %arg4[%c0_6, %c0_7] : memref<512x256xbf16, #tpu.memory_space<vmem>>, vector<512x256xbf16>
    %cst_8 = arith.constant dense<0.000000e+00> : vector<8x256xf32>
    %12 = tpu.matmul %10, %11, %cst_8 {dimension_numbers = #tpu.dot_dimension_numbers<[1], [0], [0], [1], [0, 0, 1, 1], [], []>} : vector<8x512xbf16>, vector<512x256xbf16>, vector<8x256xf32> -> vector<8x256xf32>
    %c0_9 = arith.constant 0 : index
    %c0_10 = arith.constant 0 : index
    %13 = vector.load %arg5[%c0_9, %c0_10] : memref<1x256xf32, #tpu.memory_space<vmem>>, vector<1x256xf32>
    %14 = vector.broadcast %13 : vector<1x256xf32> to vector<8x256xf32>
    %15 = arith.addf %12, %14 : vector<8x256xf32>
    %cst_11 = arith.constant 2.000000e-01 : f32
    %16 = vector.broadcast %cst_11 : f32 to vector<8x256xf32>
    %17 = arith.mulf %16, %15 : vector<8x256xf32>
    %18 = arith.maximumf %15, %17 : vector<8x256xf32>
    %c0_12 = arith.constant 0 : index
    %c0_13 = arith.constant 0 : index
    %19 = vector.load %arg6[%c0_12, %c0_13] : memref<1x256xf32, #tpu.memory_space<vmem>>, vector<1x256xf32>
    %cst_14 = arith.constant dense<0.000000e+00> : vector<1x8xf32>
    %20 = tpu.matmul %19, %18, %cst_14 {dimension_numbers = #tpu.dot_dimension_numbers<[1], [1], [0], [0], [0, 0, 1, 0], [], []>} : vector<1x256xf32>, vector<8x256xf32>, vector<1x8xf32> -> vector<1x8xf32>
    %c0_15 = arith.constant 0 : index
    %c0_16 = arith.constant 0 : index
    %21 = vector.load %arg7[%c0_15, %c0_16] : memref<1x1xf32, #tpu.memory_space<vmem>>, vector<1x1xf32>
    %22 = vector.broadcast %21 : vector<1x1xf32> to vector<1x8xf32>
    %23 = arith.addf %20, %22 : vector<1x8xf32>
    %24 = arith.negf %23 : vector<1x8xf32>
    %25 = math.exp %24 : vector<1x8xf32>
    %cst_17 = arith.constant 1.000000e+00 : f32
    %26 = vector.broadcast %cst_17 : f32 to vector<1x8xf32>
    %27 = arith.addf %26, %25 : vector<1x8xf32>
    %28 = arith.divf %26, %27 : vector<1x8xf32>
    %c0_18 = arith.constant 0 : index
    %c0_19 = arith.constant 0 : index
    %29 = vector.load %arg8[%c0_18, %c0_19] : memref<1x8xf32, #tpu.memory_space<vmem>>, vector<1x8xf32>
    tpu.vector_store %arg8[%c0_18, %c0_19], %28 {strides = array<i32>} : memref<1x8xf32, #tpu.memory_space<vmem>>, vector<1x8xf32>,
    return
  }
  func.func @transform_0(%arg0: i32) -> (i32, i32) {
    %c0_i32 = arith.constant 0 : i32
    %c0_i32_0 = arith.constant 0 : i32
    return %arg0, %c0_i32 : i32, i32
  }
  func.func @transform_1(%arg0: i32) -> (i32, i32) {
    %c0_i32 = arith.constant 0 : i32
    %c0_i32_0 = arith.constant 0 : i32
    %c0_i32_1 = arith.constant 0 : i32
    return %c0_i32, %c0_i32_0 : i32, i32
  }
  func.func @transform_2(%arg0: i32) -> (i32, i32) {
    %c0_i32 = arith.constant 0 : i32
    %c0_i32_0 = arith.constant 0 : i32
    %c0_i32_1 = arith.constant 0 : i32
    return %c0_i32, %c0_i32_0 : i32, i32
  }
  func.func @transform_3(%arg0: i32) -> (i32, i32) {
    %c0_i32 = arith.constant 0 : i32
    %c0_i32_0 = arith.constant 0 : i32
    %c0_i32_1 = arith.constant 0 : i32
    return %c0_i32, %c0_i32_0 : i32, i32
  }
  func.func @transform_4(%arg0: i32) -> (i32, i32) {
    %c0_i32 = arith.constant 0 : i32
    %c0_i32_0 = arith.constant 0 : i32
    %c0_i32_1 = arith.constant 0 : i32
    return %c0_i32, %c0_i32_0 : i32, i32
  }
  func.func @transform_5(%arg0: i32) -> (i32, i32) {
    %c0_i32 = arith.constant 0 : i32
    %c0_i32_0 = arith.constant 0 : i32
    %c0_i32_1 = arith.constant 0 : i32
    return %c0_i32, %c0_i32_0 : i32, i32
  }
  func.func @transform_6(%arg0: i32) -> (i32, i32) {
    %c0_i32 = arith.constant 0 : i32
    %c0_i32_0 = arith.constant 0 : i32
    %c0_i32_1 = arith.constant 0 : i32
    return %c0_i32, %c0_i32_0 : i32, i32
  }
  func.func @transform_7(%arg0: i32) -> (i32, i32) {
    %c0_i32 = arith.constant 0 : i32
    %c0_i32_0 = arith.constant 0 : i32
    return %arg0, %c0_i32 : i32, i32
  }
}

</mosaic_0001>

<bundles_post_ra>
// kernel: _forward.1
= control target key start
LH: loop header
LB: loop body
LE: loop exit
PB: predicated region body
PF: predicated region fallthrough
CT: control target
= control target key end

     0   :  { %s1315_s0 = inlined_call_operand.hbm [shape: f32[8,64], index: 0, kind: input, shape index: {}]   ;;  %s1316_s1 = inlined_call_operand.hbm [shape: bf16[64,512], index: 1, kind: input, shape index: {}]   ;;  %s1317_s2 = inlined_call_operand.vmem [shape: f32[1,512], index: 2, kind: input, shape index: {}]   ;;  %s1318_s3 = inlined_call_operand.hbm [shape: bf16[512,256], index: 3, kind: input, shape index: {}]   ;;  %s1319_s4 = inlined_call_operand.vmem [shape: f32[1,256], index: 4, kind: input, shape index: {}]   ;;  %s1320_s5 = inlined_call_operand.vmem [shape: f32[1,256], index: 5, kind: input, shape index: {}]   ;;  %s1321_s6 = inlined_call_operand.<no memory space> [shape: f32[1,1], index: 6, kind: input, shape index: {}]   ;;  %s1322_s7 = inlined_call_operand.hbm [shape: f32[1,8], index: 7, kind: output, shape index: {}]  }
   0x1   :  { %v12_v0 = vstv %s1321_s6 }
   0x2   :  { %13 = vst [vmem:[#allocation2] sm:$0x1] %v12_v0 }
   0x3   :  { %14 = vsyncpa [#allocation4], 0 }
   0x4   :  { %15 = vsyncpa [#allocation7], 0 }
   0x5   :  { %16 = vsyncpa [#allocation5], 0  ;;  %s1200_s26 = smov [#allocation6]   ;;  %s1106_s30 = scalar_lea.hbm %s1316_s1, 2048 }
   0x6   :  { %s32_s27 = sshll.u32 %s1200_s26, 4  ;;  %p1107_p0 = scmp.ne.s32.totalorder %s1316_s1, %s1106_s30  ;;  %s33_s27 = int_to_ptr.vmem [resolvable:$true] %s32_s27 }
   0x7   :  { %p1110_p1 = scmp.lt.u32.totalorder %s1106_s30, %s1316_s1 }
   0x9   :  { %p1112_p2 = pnand %p1110_p1, %p1107_p0 }
   0xb   :  { %1115 = shalt.err (!%p1112_p2)
}
   0xc   :  { %s1116_s6 = scalar_lea.vmem %s33_s27, 2048  ;;  %p1121_p4 = scmp.lt.s32.totalorder %s33_s27, %s33_s27 }
   0xd   :  { %p1117_p3 = scmp.ne.s32.totalorder %s33_s27, %s1116_s6  ;;  %p1122_p5 = scmp.lt.s32.totalorder %s1116_s6, %s1116_s6 }
   0xf   :  { %p1123_p6 = por %p1122_p5, %p1121_p4 }
  0x11   :  { %p1124_p7 = pnand %p1123_p6, %p1117_p3 }
  0x13   :  { %1127 = shalt.err (!%p1124_p7)
}
  0x14   :  { %s1201_s12 = smov 256   ;;  %s1202_s13 = smov 16  }
  0x15   :  { %38 = dma.hbm_to_vmem [thread:$0]  %s1316_s1, 2048, %s33_s27, [#allocation7], %s1201_s12, %s1201_s12, %s1202_s13  }
  0x16   :  { %s1203_s16 = smov [#allocation3]   ;;  %s1204_s18 = smov [#allocation8]  }
  0x17   :  { %s23_s17 = sshll.u32 %s1203_s16, 4  ;;  %s46_s19 = sshll.u32 %s1204_s18, 4  ;;  %s24_s17 = int_to_ptr.vmem [resolvable:$true] %s23_s17  ;;  %s47_s19 = int_to_ptr.vmem [resolvable:$true] %s46_s19 }
  0x18   :  { %s1128_s22 = scalar_lea.hbm %s1315_s0, 128 }
  0x19   :  { %p1129_p8 = scmp.ne.s32.totalorder %s1315_s0, %s1128_s22  ;;  %p1132_p9 = scmp.lt.u32.totalorder %s1128_s22, %s1315_s0 }
  0x1b   :  { %p1134_p10 = pnand %p1132_p9, %p1129_p8 }
  0x1d   :  { %1137 = shalt.err (!%p1134_p10)
}
  0x1e   :  { %s1138_s1 = scalar_lea.vmem %s24_s17, 128  ;;  %p1143_p12 = scmp.lt.s32.totalorder %s24_s17, %s24_s17 }
  0x1f   :  { %p1139_p11 = scmp.ne.s32.totalorder %s24_s17, %s1138_s1  ;;  %p1144_p13 = scmp.lt.s32.totalorder %s1138_s1, %s1138_s1 }
  0x21   :  { %p1145_p0 = por %p1144_p13, %p1143_p12 }
  0x23   :  { %p1146_p1 = pnand %p1145_p0, %p1139_p11 }
  0x25   :  { %1149 = shalt.err (!%p1146_p1)
}
  0x26   :  { %26 = dma.hbm_to_vmem [thread:$0]  %s1315_s0, 128, %s24_s17, [#allocation4]  }
  0x27   :  { %s1150_s8 = scalar_lea.hbm %s1318_s3, 8192 }
  0x28   :  { %p1151_p2 = scmp.ne.s32.totalorder %s1318_s3, %s1150_s8  ;;  %p1154_p3 = scmp.lt.u32.totalorder %s1150_s8, %s1318_s3 }
  0x2a   :  { %p1156_p4 = pnand %p1154_p3, %p1151_p2 }
  0x2c   :  { %1159 = shalt.err (!%p1156_p4)
}
  0x2d   :  { %s1160_s12 = scalar_lea.vmem %s47_s19, 8192  ;;  %p1165_p6 = scmp.lt.s32.totalorder %s47_s19, %s47_s19 }
  0x2e   :  { %p1161_p5 = scmp.ne.s32.totalorder %s47_s19, %s1160_s12  ;;  %p1166_p7 = scmp.lt.s32.totalorder %s1160_s12, %s1160_s12 }
  0x30   :  { %p1167_p8 = por %p1166_p7, %p1165_p6 }
  0x32   :  { %p1168_p9 = pnand %p1167_p8, %p1161_p5 }
  0x34   :  { %1171 = shalt.err (!%p1168_p9)
}
  0x35   :  { %s1205_s0 = smov 128   ;;  %s1206_s13 = smov 8  }
  0x36   :  { %52 = dma.hbm_to_vmem [thread:$0]  %s1318_s3, 8192, %s47_s19, [#allocation7], %s1205_s0, %s1205_s0, %s1206_s13  }
  0x37   :  { %1194 = dma.done.wait [#allocation4], 128  }
  0x38   :  { %1195 = vsyncadd [#allocation4], 4294967168 }
  0x39   :  { %1196 = dma.done.wait [#allocation7], 10240  }
  0x3a   :  { %1197 = vsyncadd [#allocation7], 4294957056  ;;  %v1207_v1 = vmov 0   ;;  %v982_v2 = vld [vmem:[#allocation6 + $0x4] ss:$16 sps:$4 sm:$0xff]   ;;  %v69_v18 = vld [vmem:[#allocation3] sm:$0xff] }
  0x3b   :  { %225 = vmatprep.mubr.bf16.mxu0 %v1207_v1  ;;  %266 = vmatprep.mubr.bf16.mxu1 %v1207_v1  ;;  %v984_v3 = vld [vmem:[#allocation6 + $0xc] ss:$16 sps:$4 sm:$0xff]   ;;  %v986_v4 = vld [vmem:[#allocation6] ss:$16 sps:$4 sm:$0xff]   ;;  %v987_v5 = vld [vmem:[#allocation6 + $0x8] ss:$16 sps:$4 sm:$0xff]   ;;  %v70_v21 = vpack.c.bf16 %v69_v18, %v69_v18 }
  0x3c   :  { %981 = vset.pattern.permute.xlu0 %v1207_v1  ;;  %193 = vmatprep.subr.bf16.mxu0 %v982_v2  ;;  %v988_v6 = vld [vmem:[#allocation6 + $0x24] ss:$16 sps:$4 sm:$0xff]   ;;  %v990_v7 = vld [vmem:[#allocation6 + $0x2c] ss:$16 sps:$4 sm:$0xff]   ;;  %v992_v8 = vld [vmem:[#allocation6 + $0x20] ss:$16 sps:$4 sm:$0xff]  }
  0x3d   :  { %234 = vmatprep.subr.bf16.mxu1 %v984_v3  ;;  %194 = vmatpush1.bf16.msra.mxu0 %v986_v4  ;;  %v993_v9 = vld [vmem:[#allocation6 + $0x28] ss:$16 sps:$4 sm:$0xff]   ;;  %v994_v10 = vld [vmem:[#allocation6 + $0x44] ss:$16 sps:$4 sm:$0xff]   ;;  %v996_v11 = vld [vmem:[#allocation6 + $0x4c] ss:$16 sps:$4 sm:$0xff]  }
  0x3e   :  { %235 = vmatpush1.bf16.msra.mxu1 %v987_v5  ;;  %195 = vmatprep.subr.bf16.mxu0 %v988_v6  ;;  %v998_v12 = vld [vmem:[#allocation6 + $0x40] ss:$16 sps:$4 sm:$0xff]   ;;  %v999_v13 = vld [vmem:[#allocation6 + $0x48] ss:$16 sps:$4 sm:$0xff]   ;;  %v1000_v14 = vld [vmem:[#allocation6 + $0x64] ss:$16 sps:$4 sm:$0xff]  }
  0x3f   :  { %236 = vmatprep.subr.bf16.mxu1 %v990_v7  ;;  %v1002_v15 = vld [vmem:[#allocation6 + $0x6c] ss:$16 sps:$4 sm:$0xff]   ;;  %v1004_v16 = vld [vmem:[#allocation6 + $0x60] ss:$16 sps:$4 sm:$0xff]   ;;  %v1005_v17 = vld [vmem:[#allocation6 + $0x68] ss:$16 sps:$4 sm:$0xff]  }
  0x40   :  { %v1008_v19 = vld [vmem:[#allocation8 + $0x4] ss:$8 sps:$4 sm:$0xff]   ;;  %v1006_v22 = vld [vmem:[#allocation8] ss:$8 sps:$4 sm:$0xff]   ;;  %vm189_vm0 = vcmask 523264   ;;  %vm867_vm1 = vcmask 57344  }
  0x41   :  { %196 = vmatpush1.bf16.msra.mxu0 %v992_v8  ;;  %v1011_v20 = vld [vmem:[#allocation8 + $0x104] ss:$8 sps:$4 sm:$0xff]   ;;  %v1009_v23 = vld [vmem:[#allocation8 + $0x100] ss:$8 sps:$4 sm:$0xff]   ;;  %v1014_v24 = vld [vmem:[#allocation8 + $0x14] ss:$8 sps:$4 sm:$0xff]  }
  0x42   :  { %237 = vmatpush1.bf16.msra.mxu1 %v993_v9  ;;  %197 = vmatprep.subr.bf16.mxu0 %v994_v10  ;;  %v1017_v25 = vld [vmem:[#allocation8 + $0x114] ss:$8 sps:$4 sm:$0xff]   ;;  %v1012_v26 = vld [vmem:[#allocation8 + $0x10] ss:$8 sps:$4 sm:$0xff]   ;;  %v1020_v28 = vld [vmem:[#allocation8 + $0x24] ss:$8 sps:$4 sm:$0xff]  }
  0x43   :  { %238 = vmatprep.subr.bf16.mxu1 %v996_v11  ;;  %v1015_v27 = vld [vmem:[#allocation8 + $0x110] ss:$8 sps:$4 sm:$0xff]   ;;  %v1023_v29 = vld [vmem:[#allocation8 + $0x124] ss:$8 sps:$4 sm:$0xff]   ;;  %v1018_v30 = vld [vmem:[#allocation8 + $0x20] ss:$8 sps:$4 sm:$0xff]  }
  0x44   :  { %v1021_v31 = vld [vmem:[#allocation8 + $0x120] ss:$8 sps:$4 sm:$0xff]   ;;  %v1026_v32 = vld [vmem:[#allocation8 + $0x34] ss:$8 sps:$4 sm:$0xff]   ;;  %v1024_v34 = vld [vmem:[#allocation8 + $0x30] ss:$8 sps:$4 sm:$0xff]  }
  0x45   :  { %198 = vmatpush1.bf16.msra.mxu0 %v998_v12  ;;  %v1029_v33 = vld [vmem:[#allocation8 + $0x134] ss:$8 sps:$4 sm:$0xff]   ;;  %v1027_v35 = vld [vmem:[#allocation8 + $0x130] ss:$8 sps:$4 sm:$0xff]   ;;  %v1032_v36 = vld [vmem:[#allocation8 + $0x44] ss:$8 sps:$4 sm:$0xff]  }
  0x46   :  { %239 = vmatpush1.bf16.msra.mxu1 %v999_v13  ;;  %199 = vmatprep.subr.bf16.mxu0 %v1000_v14  ;;  %v1035_v37 = vld [vmem:[#allocation8 + $0x144] ss:$8 sps:$4 sm:$0xff]   ;;  %v1030_v38 = vld [vmem:[#allocation8 + $0x40] ss:$8 sps:$4 sm:$0xff]   ;;  %v1038_v40 = vld [vmem:[#allocation8 + $0x54] ss:$8 sps:$4 sm:$0xff]  }
  0x47   :  { %240 = vmatprep.subr.bf16.mxu1 %v1002_v15  ;;  %v1033_v39 = vld [vmem:[#allocation8 + $0x140] ss:$8 sps:$4 sm:$0xff]   ;;  %v1041_v41 = vld [vmem:[#allocation8 + $0x154] ss:$8 sps:$4 sm:$0xff]   ;;  %v1036_v42 = vld [vmem:[#allocation8 + $0x50] ss:$8 sps:$4 sm:$0xff]  }
  0x48   :  { %v1039_v43 = vld [vmem:[#allocation8 + $0x150] ss:$8 sps:$4 sm:$0xff]   ;;  %v1044_v44 = vld [vmem:[#allocation8 + $0x64] ss:$8 sps:$4 sm:$0xff]   ;;  %v1042_v46 = vld [vmem:[#allocation8 + $0x60] ss:$8 sps:$4 sm:$0xff]  }
  0x49   :  { %200 = vmatpush1.bf16.msra.mxu0 %v1004_v16  ;;  %v1047_v45 = vld [vmem:[#allocation8 + $0x164] ss:$8 sps:$4 sm:$0xff]   ;;  %v1045_v47 = vld [vmem:[#allocation8 + $0x160] ss:$8 sps:$4 sm:$0xff]   ;;  %v1050_v48 = vld [vmem:[#allocation8 + $0x74] ss:$8 sps:$4 sm:$0xff]  }
  0x4a   :  { %241 = vmatpush1.bf16.msra.mxu1 %v1005_v17  ;;  %724 = vmatprep.subr.bf16.mxu0 %v1011_v20  ;;  %v1053_v49 = vld [vmem:[#allocation8 + $0x174] ss:$8 sps:$4 sm:$0xff]   ;;  %v1048_v50 = vld [vmem:[#allocation8 + $0x70] ss:$8 sps:$4 sm:$0xff]   ;;  %v1056_v52 = vld [vmem:[#allocation8 + $0x84] ss:$8 sps:$4 sm:$0xff]   ;;  %v89_v20 = vlaneseq }
  0x4b   :  { %683 = vmatprep.subr.bf16.mxu1 %v1008_v19  ;;  %v1051_v51 = vld [vmem:[#allocation8 + $0x170] ss:$8 sps:$4 sm:$0xff]   ;;  %v1059_v53 = vld [vmem:[#allocation8 + $0x184] ss:$8 sps:$4 sm:$0xff]   ;;  %v1054_v54 = vld [vmem:[#allocation8 + $0x80] ss:$8 sps:$4 sm:$0xff]  }
  0x4c   :  { %901 = vmatmul.mubr.msk.bf16.vlgmr.msra.gmra.mrb[0].mxu0 %vm189_vm0, %v70_v21  ;;  %v1057_v55 = vld [vmem:[#allocation8 + $0x180] ss:$8 sps:$4 sm:$0xff]   ;;  %v1062_v56 = vld [vmem:[#allocation8 + $0x94] ss:$8 sps:$4 sm:$0xff]   ;;  %v1060_v58 = vld [vmem:[#allocation8 + $0x90] ss:$8 sps:$4 sm:$0xff]  }
  0x4d   :  { %902 = vmatmul.mubr.msk.bf16.vlgmr.msra.gmra.mrb[0].mxu1 %vm189_vm0, %v70_v21  ;;  %725 = vmatpush1.bf16.msra.mxu0 %v1009_v23  ;;  %v1065_v57 = vld [vmem:[#allocation8 + $0x194] ss:$8 sps:$4 sm:$0xff]   ;;  %v1063_v59 = vld [vmem:[#allocation8 + $0x190] ss:$8 sps:$4 sm:$0xff]   ;;  %v1068_v60 = vld [vmem:[#allocation8 + $0xa4] ss:$8 sps:$4 sm:$0xff]  }
  0x4e   :  { %684 = vmatpush1.bf16.msra.mxu1 %v1006_v22  ;;  %726 = vmatprep.subr.bf16.mxu0 %v1017_v25  ;;  %v1071_v61 = vld [vmem:[#allocation8 + $0x1a4] ss:$8 sps:$4 sm:$0xff]   ;;  %v1066_v62 = vld [vmem:[#allocation8 + $0xa0] ss:$8 sps:$4 sm:$0xff]   ;;  %v1074_v0 = vld [vmem:[#allocation8 + $0xb4] ss:$8 sps:$4 sm:$0xff]  }
  0x4f   :  { %685 = vmatprep.subr.bf16.mxu1 %v1014_v24  ;;  %v1069_v63 = vld [vmem:[#allocation8 + $0x1a0] ss:$8 sps:$4 sm:$0xff]   ;;  %v1077_v1 = vld [vmem:[#allocation8 + $0x1b4] ss:$8 sps:$4 sm:$0xff]   ;;  %v1072_v2 = vld [vmem:[#allocation8 + $0xb0] ss:$8 sps:$4 sm:$0xff]  }
  0x50   :  { %v1075_v3 = vld [vmem:[#allocation8 + $0x1b0] ss:$8 sps:$4 sm:$0xff]   ;;  %v1080_v4 = vld [vmem:[#allocation8 + $0xc4] ss:$8 sps:$4 sm:$0xff]   ;;  %v1078_v6 = vld [vmem:[#allocation8 + $0xc0] ss:$8 sps:$4 sm:$0xff]  }
  0x51   :  { %727 = vmatpush1.bf16.msra.mxu0 %v1015_v27  ;;  %v1083_v5 = vld [vmem:[#allocation8 + $0x1c4] ss:$8 sps:$4 sm:$0xff]   ;;  %v1081_v7 = vld [vmem:[#allocation8 + $0x1c0] ss:$8 sps:$4 sm:$0xff]   ;;  %v1086_v8 = vld [vmem:[#allocation8 + $0xd4] ss:$8 sps:$4 sm:$0xff]  }
  0x52   :  { %686 = vmatpush1.bf16.msra.mxu1 %v1012_v26  ;;  %728 = vmatprep.subr.bf16.mxu0 %v1023_v29  ;;  %v1089_v9 = vld [vmem:[#allocation8 + $0x1d4] ss:$8 sps:$4 sm:$0xff]   ;;  %v1084_v10 = vld [vmem:[#allocation8 + $0xd0] ss:$8 sps:$4 sm:$0xff]   ;;  %v1092_v12 = vld [vmem:[#allocation8 + $0xe4] ss:$8 sps:$4 sm:$0xff]  }
  0x53   :  { %687 = vmatprep.subr.bf16.mxu1 %v1020_v28  ;;  %v1087_v11 = vld [vmem:[#allocation8 + $0x1d0] ss:$8 sps:$4 sm:$0xff]   ;;  %v1095_v13 = vld [vmem:[#allocation8 + $0x1e4] ss:$8 sps:$4 sm:$0xff]   ;;  %v1090_v14 = vld [vmem:[#allocation8 + $0xe0] ss:$8 sps:$4 sm:$0xff]  }
  0x54   :  { %v1093_v15 = vld [vmem:[#allocation8 + $0x1e0] ss:$8 sps:$4 sm:$0xff]   ;;  %v1098_v16 = vld [vmem:[#allocation8 + $0xf4] ss:$8 sps:$4 sm:$0xff]   ;;  %v1096_v18 = vld [vmem:[#allocation8 + $0xf0] ss:$8 sps:$4 sm:$0xff]  }
  0x55   :  { %729 = vmatpush1.bf16.msra.mxu0 %v1021_v31  ;;  %v1101_v17 = vld [vmem:[#allocation8 + $0x1f4] ss:$8 sps:$4 sm:$0xff]   ;;  %v1099_v19 = vld [vmem:[#allocation8 + $0x1f0] ss:$8 sps:$4 sm:$0xff]   ;;  %v90_v21 = vshrl.u32 %v89_v20, 7 }
  0x56   :  { %688 = vmatpush1.bf16.msra.mxu1 %v1018_v30  ;;  %730 = vmatprep.subr.bf16.mxu0 %v1029_v33  ;;  %v87_v24 = vld [vmem:[%s1317_s2] sm:$0xf] }
  0x57   :  { %689 = vmatprep.subr.bf16.mxu1 %v1026_v32  ;;  %v1288_v22 = vsub.s32 0, %v90_v21  ;;  %v99_v23 = vsub.s32 2, %v90_v21  ;;  %v95_v25 = vsub.s32 1, %v90_v21  ;;  %v103_v26 = vsub.s32 3, %v90_v21 }
  0x59   :  { %731 = vmatpush1.bf16.msra.mxu0 %v1027_v35  ;;  %v92_v27 = vrot.slane %v87_v24, %v1288_v22  ;;  %v100_v28 = vrot.slane %v87_v24, %v99_v23  ;;  %v96_v29 = vrot.slane %v87_v24, %v95_v25  ;;  %v104_v30 = vrot.slane %v87_v24, %v103_v26 }
  0x5a   :  { %690 = vmatpush1.bf16.msra.mxu1 %v1024_v34  ;;  %732 = vmatprep.subr.bf16.mxu0 %v1035_v37 }
  0x5b   :  { %691 = vmatprep.subr.bf16.mxu1 %v1032_v36 }
  0x5d   :  { %733 = vmatpush1.bf16.msra.mxu0 %v1033_v39 }
  0x5e   :  { %692 = vmatpush1.bf16.msra.mxu1 %v1030_v38  ;;  %734 = vmatprep.subr.bf16.mxu0 %v1041_v41 }
  0x5f   :  { %693 = vmatprep.subr.bf16.mxu1 %v1038_v40 }
  0x61   :  { %735 = vmatpush1.bf16.msra.mxu0 %v1039_v43 }
  0x62   :  { %694 = vmatpush1.bf16.msra.mxu1 %v1036_v42  ;;  %736 = vmatprep.subr.bf16.mxu0 %v1047_v45 }
  0x63   :  { %695 = vmatprep.subr.bf16.mxu1 %v1044_v44 }
  0x65   :  { %737 = vmatpush1.bf16.msra.mxu0 %v1045_v47 }
  0x66   :  { %696 = vmatpush1.bf16.msra.mxu1 %v1042_v46  ;;  %738 = vmatprep.subr.bf16.mxu0 %v1053_v49 }
  0x67   :  { %697 = vmatprep.subr.bf16.mxu1 %v1050_v48 }
  0x69   :  { %739 = vmatpush1.bf16.msra.mxu0 %v1051_v51 }
  0x6a   :  { %698 = vmatpush1.bf16.msra.mxu1 %v1048_v50  ;;  %740 = vmatprep.subr.bf16.mxu0 %v1059_v53 }
  0x6b   :  { %699 = vmatprep.subr.bf16.mxu1 %v1056_v52 }
  0x6d   :  { %741 = vmatpush1.bf16.msra.mxu0 %v1057_v55  ;;  %v769_v55 = vld [vmem:[%s1320_s5] sm:$0x3] }
  0x6e   :  { %700 = vmatpush1.bf16.msra.mxu1 %v1054_v54  ;;  %742 = vmatprep.subr.bf16.mxu0 %v1065_v57  ;;  %v770_v57 = vld [vmem:[#allocation2] sm:$0x1] }
  0x6f   :  { %701 = vmatprep.subr.bf16.mxu1 %v1062_v56  ;;  %v788_v56 = vrot.slane %v769_v55, %v95_v25  ;;  %773 = vperm.xlu0 %981, %v770_v57  }
  0x71   :  { %743 = vmatpush1.bf16.msra.mxu0 %v1063_v59 }
  0x72   :  { %702 = vmatpush1.bf16.msra.mxu1 %v1060_v58  ;;  %744 = vmatprep.subr.bf16.mxu0 %v1071_v61  ;;  %v351_v58 = vld [vmem:[%s1319_s4] sm:$0x3]  ;;  %s1208_s4 = smov [#allocation9]  }
  0x73   :  { %703 = vmatprep.subr.bf16.mxu1 %v1068_v60  ;;  %v356_v59 = vrot.slane %v351_v58, %v1288_v22  ;;  %v360_v60 = vrot.slane %v351_v58, %v95_v25  ;;  %s875_s5 = sshll.u32 %s1208_s4, 4  ;;  %s876_s5 = int_to_ptr.vmem [resolvable:$true] %s875_s5 }
  0x74   :  { %s1172_s20 = scalar_lea.vmem %s876_s5, 16  ;;  %s1176_s21 = scalar_lea.vmem %s876_s5, 32 }
  0x75   :  { %745 = vmatpush1.bf16.msra.mxu0 %v1069_v63  ;;  %p1173_p10 = scmp.ne.s32.totalorder %s876_s5, %s1172_s20  ;;  %p1177_p11 = scmp.lt.s32.totalorder %s876_s5, %s876_s5 }
  0x76   :  { %704 = vmatpush1.bf16.msra.mxu1 %v1066_v62  ;;  %746 = vmatprep.subr.bf16.mxu0 %v1077_v1  ;;  %p1178_p12 = scmp.lt.s32.totalorder %s1176_s21, %s1172_s20 }
  0x77   :  { %705 = vmatprep.subr.bf16.mxu1 %v1074_v0 }
  0x78   :  { %p1179_p13 = por %p1178_p12, %p1177_p11 }
  0x79   :  { %747 = vmatpush1.bf16.msra.mxu0 %v1075_v3 }
  0x7a   :  { %706 = vmatpush1.bf16.msra.mxu1 %v1072_v2  ;;  %748 = vmatprep.subr.bf16.mxu0 %v1083_v5  ;;  %p1180_p0 = pnand %p1179_p13, %p1173_p10 }
  0x7b   :  { %707 = vmatprep.subr.bf16.mxu1 %v1080_v4 }
  0x7d   :  { %749 = vmatpush1.bf16.msra.mxu0 %v1081_v7 }
  0x7e   :  { %708 = vmatpush1.bf16.msra.mxu1 %v1078_v6  ;;  %750 = vmatprep.subr.bf16.mxu0 %v1089_v9 }
  0x7f   :  { %709 = vmatprep.subr.bf16.mxu1 %v1086_v8 }
  0x81   :  { %751 = vmatpush1.bf16.msra.mxu0 %v1087_v11 }
  0x82   :  { %710 = vmatpush1.bf16.msra.mxu1 %v1084_v10  ;;  %752 = vmatprep.subr.bf16.mxu0 %v1095_v13  ;;  %v784_v13 = vrot.slane %v769_v55, %v1288_v22 }
  0x83   :  { %711 = vmatprep.subr.bf16.mxu1 %v1092_v12 }
  0x85   :  { %753 = vmatpush1.bf16.msra.mxu0 %v1093_v15 }
  0x86   :  { %712 = vmatpush1.bf16.msra.mxu1 %v1090_v14  ;;  %754 = vmatprep.subr.bf16.mxu0 %v1101_v17 }
  0x87   :  { %713 = vmatprep.subr.bf16.mxu1 %v1098_v16 }
  0x89   :  { %755 = vmatpush1.bf16.msra.mxu0 %v1099_v19 }
  0x8a   :  { %714 = vmatpush1.bf16.msra.mxu1 %v1096_v18 }
  0xee   :  { %v774_v14 = vpop.permute.xlu0 %773 }
  0xef   :  { %v779_v15 = vrot.slane %v774_v14, %v1288_v22 }
 0x11f   :  { %v227_v31 = vpop.f32.mrb[0].mxu0 }
 0x120   :  { %v268_v32 = vpop.f32.mrb[0].mxu1  ;;  %v228_v33 = vadd.f32 %v227_v31, %v92_v27  ;;  %v229_v35 = vpop.f32.mrb[1].mxu0 }
 0x121   :  { %v269_v34 = vadd.f32 %v268_v32, %v100_v28  ;;  %v270_v36 = vpop.f32.mrb[1].mxu1  ;;  %v230_v37 = vadd.f32 %v229_v35, %v96_v29  ;;  %v231_v39 = vpop.f32.mrb[2].mxu0 }
 0x122   :  { %v271_v38 = vadd.f32 %v270_v36, %v104_v30  ;;  %v272_v40 = vpop.f32.mrb[2].mxu1  ;;  %v275_v41 = vmul.f32 0.2, %v228_v33  ;;  %v232_v43 = vpop.f32.mrb[3].mxu0 }
 0x123   :  { %v277_v42 = vmul.f32 0.2, %v269_v34  ;;  %v273_v44 = vpop.f32.mrb[3].mxu1  ;;  %v276_v45 = vmul.f32 0.2, %v230_v37 }
 0x124   :  { %v278_v46 = vmul.f32 0.2, %v271_v38  ;;  %v279_v47 = vmax.f32 %v228_v33, %v275_v41 }
 0x125   :  { %v281_v48 = vmax.f32 %v269_v34, %v277_v42  ;;  %v280_v49 = vmax.f32 %v230_v37, %v276_v45 }
 0x126   :  { %v282_v50 = vmax.f32 %v271_v38, %v278_v46  ;;  %v283_v53 = vpack.c.bf16 %v279_v47, %v279_v47 }
 0x127   :  { %v284_v51 = vpack.c.bf16 %v280_v49, %v280_v49  ;;  %v285_v54 = vpack.c.bf16 %v281_v48, %v281_v48 }
 0x128   :  { %v286_v52 = vpack.c.bf16 %v282_v50, %v282_v50 }
 0x129   :  { %715 = vmatprep.mubr.bf16.mxu1 %v284_v51 }
 0x12a   :  { %756 = vmatprep.mubr.bf16.mxu0 %v286_v52  ;;  %716 = vmatmul.mubr.bf16.vlgmr.msra.gmra.mrb[4].mxu1 %v283_v53 }
 0x12b   :  { %757 = vmatmul.mubr.bf16.vlgmr.msra.gmra.mrb[4].mxu0 %v285_v54  ;;  %855 = vmatprep.mubr.f32.mxu1 %v788_v56 }
 0x1fd   :  { %v717_v61 = vpop.f32.mrb[4].mxu1 }
 0x1fe   :  { %v758_v62 = vpop.f32.mrb[4].mxu0  ;;  %v718_v63 = vadd.f32 %v717_v61, %v356_v59  ;;  %v719_v0 = vpop.f32.mrb[5].mxu1 }
 0x1ff   :  { %v760_v1 = vpop.f32.mrb[5].mxu0  ;;  %v720_v2 = vadd.f32 %v719_v0, %v360_v60  ;;  %v721_v3 = vpop.f32.mrb[6].mxu1 }
 0x200   :  { %v762_v4 = vpop.f32.mrb[6].mxu0  ;;  %v759_v5 = vadd.f32 %v758_v62, %v718_v63  ;;  %v722_v6 = vpop.f32.mrb[7].mxu1 }
 0x201   :  { %v763_v7 = vpop.f32.mrb[7].mxu0  ;;  %v761_v8 = vadd.f32 %v760_v1, %v720_v2 }
 0x202   :  { %v765_v9 = vmul.f32 0.2, %v759_v5 }
 0x203   :  { %v766_v10 = vmul.f32 0.2, %v761_v8 }
 0x204   :  { %v767_v12 = vmax.f32 %v759_v5, %v765_v9 }
 0x205   :  { %v768_v11 = vmax.f32 %v761_v8, %v766_v10 }
 0x207   :  { %791 = vmatprep.subr.mxu1 %v768_v11 }
 0x208   :  { %792 = vmatpush1.xpose.msra.mxu1 %v767_v12 }
 0x20b   :  { %856 = vmatmul.mubr.f32.vlgmr.msra.gmra.mrb[8].mxu1 %v784_v13 }
 0x2de   :  { %v857_v16 = vpop.f32.mrb[8].mxu1 }
 0x2df   :  { %v858_v17 = vadd.f32 %v857_v16, %v779_v15  ;;  %v859_v18 = vpop.f32.mrb[9].mxu1 }
 0x2e1   :  { %v967_v19 = vmul.f32 -1.442695, %v858_v17 }
 0x2e3   :  { %1102 = vpow2.f32 %v967_v19 }
 0x2ed   :  { %v1103_v20 = vpop.eup %1102 }
 0x2ee   :  { %v864_v21 = vadd.f32 1.0, %v1103_v20 }
 0x2f0   :  { %1104 = vrcp.f32 %v864_v21 }
 0x2fa   :  { %v1105_v23 = vpop.eup %1104 }
 0x2fb   :  { %868 = vst.msk [vmem:[#allocation9] sm:$0x1] %vm867_vm1, %v1105_v23 }
 0x2fc   :  { %1183 = shalt.err (!%p1180_p0)
}
 0x2fd   :  { %s1184_s24 = scalar_lea.hbm %s1322_s7, 16 }
 0x2fe   :  { %p1185_p1 = scmp.ne.s32.totalorder %s1322_s7, %s1184_s24  ;;  %p1188_p2 = scmp.lt.u32.totalorder %s1184_s24, %s1322_s7 }
 0x300   :  { %p1190_p3 = pnand %p1188_p2, %p1185_p1 }
 0x302   :  { %1193 = shalt.err (!%p1190_p3)
}
 0x303   :  { %878 = dma.vmem_to_hbm [thread:$0]  %s876_s5, 16, %s1322_s7, [#allocation5]  }
 0x304   :  { %1198 = dma.done.wait [#allocation5], 16  }
 0x305   :  { %1199 = vsyncadd [#allocation5], 4294967280 }
 0x306   :  { %882 = vsyncpa [#allocation4], 1 }
 0x307   :  { %883 = vsyncpa [#allocation7], 1 }
 0x308   :  { %884 = vsyncpa [#allocation5], 1 }

</bundles_post_ra>
